<compile_context>
chip_gen: v6e
topology: v6e:2x2x1
jax: 0.10.0
libtpu: 0.0.40
codegen_flags: <defaults>
</compile_context>

<pallas_src>
import math

import jax
import jax.numpy as jnp
from jax.experimental import pallas as pl
from jax.experimental.pallas import tpu as pltpu


# ----------------------------------------------------------------------------
# Deterministic "parameters" (unused in forward, mirrors nn.Linear(1, 1)).
# ----------------------------------------------------------------------------
def init_baseline_params():
    key = jax.random.PRNGKey(0)
    kw, kb = jax.random.split(key)
    # nn.Linear(1, 1): weight (1, 1), bias (1,), uniform(-1, 1) since fan_in=1.
    dummy_w = jax.random.uniform(kw, (1, 1), jnp.float32, -1.0, 1.0)
    dummy_b = jax.random.uniform(kb, (1,), jnp.float32, -1.0, 1.0)
    return {"dummy_w": dummy_w, "dummy_b": dummy_b}


# ----------------------------------------------------------------------------
# Pallas identity (copy) kernel.
# ----------------------------------------------------------------------------
def _copy_kernel(x_ref, o_ref):
    o_ref[...] = x_ref[...]


# Lane-dense layout constants: 512 lanes (4 x 128), 1024 sublane rows per tile
# -> 512 * 1024 * 4 B = 2 MiB per f32 tile.
_LANES = 512
_BLOCK_ROWS = 1024


def baseline_forward(loc):
    """Identity forward pass of `Baseline`, executed as a Pallas TPU kernel."""
    orig_shape = loc.shape
    total = math.prod(orig_shape) if orig_shape else 1
    itemsize = jnp.dtype(loc.dtype).itemsize

    if total > 0 and total % _LANES == 0:
        # ---- Lane-dense tiled path -----------------------------------------
        rows = total // _LANES
        x2d = loc.reshape(rows, _LANES)
        block_rows = min(_BLOCK_ROWS, rows)   # full dim if small, else 1024
        grid = (pl.cdiv(rows, block_rows),)

        out = pl.pallas_call(
            _copy_kernel,
            out_shape=jax.ShapeDtypeStruct((rows, _LANES), x2d.dtype),
            grid=grid,
            in_specs=[pl.BlockSpec((block_rows, _LANES), lambda i: (i, 0))],
            out_specs=pl.BlockSpec((block_rows, _LANES), lambda i: (i, 0)),
            input_output_aliases={0: 0},
            cost_estimate=pl.CostEstimate(
                flops=0,
                transcendentals=0,
                bytes_accessed=2 * total * itemsize,
            ),
            compiler_params=pltpu.CompilerParams(
                dimension_semantics=("parallel",),
            ),
        )(x2d)
        return out.reshape(orig_shape)

    # ---- Small / irregular fallback: one whole-array block -----------------
    # block_shape == full array dims, so no (8,128) constraint, no padding,
    # and no post-slice.
    if loc.ndim == 0:
        x2d = loc.reshape(1, 1)
    elif loc.ndim == 1:
        x2d = loc.reshape(1, -1)
    else:
        x2d = loc.reshape(-1, orig_shape[-1])

    out = pl.pallas_call(
        _copy_kernel,
        out_shape=jax.ShapeDtypeStruct(x2d.shape, x2d.dtype),
        grid=(1,),
        in_specs=[pl.BlockSpec(x2d.shape, lambda i: (0, 0))],
        out_specs=pl.BlockSpec(x2d.shape, lambda i: (0, 0)),
        input_output_aliases={0: 0},
        cost_estimate=pl.CostEstimate(
            flops=0,
            transcendentals=0,
            bytes_accessed=2 * total * itemsize,
        ),
    )(x2d)
    return out.reshape(orig_shape)


if __name__ == "__main__":
    params = init_baseline_params()  # dummy Linear(1,1) params, unused in forward

    key = jax.random.PRNGKey(0)
    k0, k1 = jax.random.split(key)

    # 1) Small n-body-style input [batch, n_nodes, dims] -> fallback path.
    loc_small = jax.random.normal(k0, (2, 8, 3), dtype=jnp.float32)
    out_small = jax.block_until_ready(baseline_forward(loc_small))
    assert out_small.shape == loc_small.shape
    assert out_small.dtype == loc_small.dtype
    assert bool(jnp.allclose(out_small, loc_small)), "identity mismatch (small)"

    # 2) Larger input exercising the lane-dense tiled path (2 grid steps).
    loc_tiled = jax.random.normal(k1, (2, 4096, 128), dtype=jnp.float32)
    out_tiled = jax.block_until_ready(baseline_forward(loc_tiled))
    assert out_tiled.shape == loc_tiled.shape
    assert out_tiled.dtype == loc_tiled.dtype
    assert bool(jnp.allclose(out_tiled, loc_tiled)), "identity mismatch (tiled)"

    print("KERNEL_OK")
</pallas_src>

<mosaic_0001>
module attributes {stable_mosaic.version = 11 : i64} {
  func.func @_copy_kernel(%arg0: i32, %arg1: memref<16x3xf32, #tpu.memory_space<vmem>>, %arg2: memref<16x3xf32, #tpu.memory_space<vmem>>) attributes {dimension_semantics = [#tpu.dimension_semantics<arbitrary>], iteration_bounds = array<i64: 1>, scalar_prefetch = 0 : i64, scratch_operands = 0 : i64, tpu.core_type = #tpu.core_type<tc>, window_params = [{pipeline_mode = #tpu.pipeline_mode<synchronous>, transform_indices = @transform_0, window_bounds = array<i64: 16, 3>}, {pipeline_mode = #tpu.pipeline_mode<synchronous>, transform_indices = @transform_1, window_bounds = array<i64: 16, 3>}]} {
    %c0 = arith.constant 0 : index
    %c0_0 = arith.constant 0 : index
    %0 = vector.load %arg1[%c0, %c0_0] : memref<16x3xf32, #tpu.memory_space<vmem>>, vector<16x3xf32>
    %c0_1 = arith.constant 0 : index
    %c0_2 = arith.constant 0 : index
    %1 = vector.load %arg2[%c0_1, %c0_2] : memref<16x3xf32, #tpu.memory_space<vmem>>, vector<16x3xf32>
    tpu.vector_store %arg2[%c0_1, %c0_2], %0 {strides = array<i32>} : memref<16x3xf32, #tpu.memory_space<vmem>>, vector<16x3xf32>,
    return
  }
  func.func @transform_0(%arg0: i32) -> (i32, i32) {
    %c0_i32 = arith.constant 0 : i32
    %c0_i32_0 = arith.constant 0 : i32
    %c0_i32_1 = arith.constant 0 : i32
    return %c0_i32, %c0_i32_0 : i32, i32
  }
  func.func @transform_1(%arg0: i32) -> (i32, i32) {
    %c0_i32 = arith.constant 0 : i32
    %c0_i32_0 = arith.constant 0 : i32
    %c0_i32_1 = arith.constant 0 : i32
    return %c0_i32, %c0_i32_0 : i32, i32
  }
}

</mosaic_0001>

<bundles_post_ra>
// kernel: tpu_custom_call.1
= control target key start
LH: loop header
LB: loop body
LE: loop exit
PB: predicated region body
PF: predicated region fallthrough
CT: control target
= control target key end

     0   :  { %vm10_vm0 = vcmask 23552   ;;  %s39_s0 = inlined_call_operand.vmem [shape: f32[16,3], index: 0, kind: input, shape index: {}, may-alias: {0,1}]   ;;  %s40_s1 = inlined_call_operand.vmem [shape: f32[16,3], index: 1, kind: output, shape index: {}, may-alias: {0,1}]  }
   0x1   :  { %v8_v0 = vld [vmem:[%s39_s0] sm:$0xff]  ;;  %v9_v1 = vld [vmem:[%s39_s0 + $0x8] sm:$0xff] }
   0x2   :  { %11 = vst.msk [vmem:[%s40_s1] sm:$0xff] %vm10_vm0, %v8_v0  ;;  %12 = vst.msk [vmem:[%s40_s1 + $0x8] sm:$0xff] %vm10_vm0, %v9_v1 }

</bundles_post_ra>
